<compile_context>
chip_gen: v5e
topology: v5e:2x2
jax: 0.10.0
libtpu: 0.0.40
codegen_flags: <defaults>
</compile_context>

<pallas_src>
import functools

import jax
import jax.numpy as jnp
from jax.experimental import pallas as pl
from jax.experimental.pallas import tpu as pltpu


# ----------------------------------------------------------------------------
# Fast path: num_classes == 2 (module default), class-interleaved lane layout.
# ----------------------------------------------------------------------------
def _gce2_kernel(pred_ref, mult_ref, out_ref, acc_ref, mask_ref, *, q):
    # Grid: (partials ["parallel" -> megacore], row tiles ["arbitrary" reduction]).
    i = pl.program_id(1)

    @pl.when(i == 0)
    def _():
        acc_ref[...] = jnp.zeros_like(acc_ref)
        # Build the valid-lane mask once per partial.  `src[l]` is the index of
        # the lane whose value pltpu.roll(..., shift=1) delivers to lane l; a
        # lane is "valid" iff that source lane is its class-pair partner.  This
        # makes the kernel correct regardless of the rotate direction.
        lane = jax.lax.broadcasted_iota(jnp.int32, mask_ref.shape, 1)
        src = pltpu.roll(lane, shift=1, axis=1)
        partner = lane + 1 - 2 * (lane % 2)
        mask_ref[...] = (src == partner).astype(jnp.float32)

    # (tile_rows, 128): even lanes hold x0, odd lanes hold x1 (class-interleaved).
    x = pred_ref[...].astype(jnp.float32)
    # Per-lane multiplier sign: -sign(label) at the class-0 lane, +sign at class-1.
    m_pos = mult_ref[...].astype(jnp.int32) > 0
    y = jnp.where(m_pos, x, -x)
    # Pair-sum of adjacent lanes -> z = x_true - x_other on the valid lanes.
    z = y + pltpu.roll(y, shift=1, axis=1)

    # For 2 classes: softmax(pred)[label] == sigmoid(x_true - x_other).
    p_true = 1.0 / (1.0 + jnp.exp(-z))
    loss = (1.0 - jnp.power(p_true + 1e-8, q)) * (1.0 / q)

    # Lane-dense elementwise accumulation (garbage lanes masked to zero).
    acc_ref[...] = acc_ref[...] + loss * mask_ref[...]

    # Epilogue: a single cross-lane reduction per partial.
    @pl.when(i == pl.num_programs(1) - 1)
    def _():
        out_ref[...] = jnp.full(out_ref.shape, jnp.sum(acc_ref[...]),
                                dtype=jnp.float32)


def _pick_tile_rows(n_rows, max_rows):
    """Row tile (multiple of 32 so int8 label blocks tile cleanly) dividing
    n_rows, preferring an even tile count so the leading 'parallel' axis can
    use both TensorCores on v7x.  Falls back to one whole-array block."""
    cands = [t for t in range(32, min(n_rows, max_rows) + 1, 32)
             if n_rows % t == 0]
    if not cands:
        return n_rows
    even = [t for t in cands if (n_rows // t) % 2 == 0]
    return max(even) if even else max(cands)


def _gce_loss_2class(pred, labels, *, q, tile_rows, max_tile_rows):
    N, _ = pred.shape
    n_rows = N // 64

    # Free, layout-preserving re-view: (N, 2) row-major == (N//64, 128)
    # row-major, so NO transpose / relayout pass touches HBM before the kernel.
    pred2 = pred.reshape(n_rows, 128)

    # Per-lane +/-1 multiplier derived from labels:
    #   lane 2b   -> -(2*l_b - 1)   (class-0 logit lane)
    #   lane 2b+1 -> +(2*l_b - 1)   (class-1 logit lane)
    # int8 keeps the label-side DMA at 2 bytes/sample.
    s = (2 * labels.astype(jnp.int32) - 1).astype(jnp.int8)
    mult = jnp.stack([-s, s], axis=-1).reshape(n_rows, 128)

    if tile_rows is None:
        tile_rows = _pick_tile_rows(n_rows, max_tile_rows)
    assert n_rows % tile_rows == 0, "batch rows must be divisible by tile_rows"
    assert tile_rows % 32 == 0 or tile_rows == n_rows, (
        "row tiles must be multiples of 32 unless covering the whole array")

    n_tiles = n_rows // tile_rows
    num_parts = 2 if n_tiles % 2 == 0 else 1   # 2 -> both TCs on v7x megacore
    inner = n_tiles // num_parts

    kernel = functools.partial(_gce2_kernel, q=float(q))

    partials = pl.pallas_call(
        kernel,
        out_shape=jax.ShapeDtypeStruct((num_parts, 8, 128), jnp.float32),
        grid_spec=pltpu.PrefetchScalarGridSpec(
            num_scalar_prefetch=0,
            grid=(num_parts, inner),
            in_specs=[
                pl.BlockSpec((tile_rows, 128), lambda c, i: (c * inner + i, 0)),
                pl.BlockSpec((tile_rows, 128), lambda c, i: (c * inner + i, 0)),
            ],
            out_specs=pl.BlockSpec((1, 8, 128), lambda c, i: (c, 0, 0)),
            scratch_shapes=[
                pltpu.VMEM((tile_rows, 128), jnp.float32),   # running per-lane loss
                pltpu.VMEM((1, 128), jnp.float32),           # valid-lane mask
            ],
        ),
        compiler_params=pltpu.CompilerParams(
            dimension_semantics=("parallel", "arbitrary"),
        ),
    )(pred2, mult)

    # Combine per-core partial sums and take the mean over the true batch size.
    return jnp.sum(partials[:, 0, 0]) / jnp.float32(N)


# ----------------------------------------------------------------------------
# General path: any num_classes, natural (N, C) layout (no transpose either).
# ----------------------------------------------------------------------------
def _gce_general_kernel(pred_ref, labels_ref, out_ref, acc_ref, *, q):
    i = pl.program_id(0)

    @pl.when(i == 0)
    def _():
        acc_ref[...] = jnp.zeros_like(acc_ref)

    logits = pred_ref[...].astype(jnp.float32)          # (tile_n, C)
    labels = labels_ref[...]                            # (tile_n, 1) int32

    m = jnp.max(logits, axis=1, keepdims=True)
    e = jnp.exp(logits - m)
    denom = jnp.sum(e, axis=1, keepdims=True)
    cls = jax.lax.broadcasted_iota(jnp.int32, logits.shape, 1)
    num = jnp.sum(jnp.where(cls == labels, e, 0.0), axis=1, keepdims=True)
    p_true = num / denom                                 # (tile_n, 1)

    loss = (1.0 - jnp.power(p_true + 1e-8, q)) * (1.0 / q)
    acc_ref[...] = acc_ref[...] + loss

    @pl.when(i == pl.num_programs(0) - 1)
    def _():
        out_ref[...] = jnp.full(out_ref.shape, jnp.sum(acc_ref[...]),
                                dtype=jnp.float32)


def _gce_loss_general(pred, labels, *, q, tile_n, max_tile_n):
    N, C = pred.shape
    labels2d = labels.astype(jnp.int32).reshape(N, 1)

    if tile_n is None:
        cands = [t for t in range(32, min(N, max_tile_n) + 1, 32) if N % t == 0]
        tile_n = max(cands) if cands else N
    assert N % tile_n == 0, "batch must be divisible by tile_n"

    kernel = functools.partial(_gce_general_kernel, q=float(q))

    out = pl.pallas_call(
        kernel,
        out_shape=jax.ShapeDtypeStruct((8, 128), jnp.float32),
        grid_spec=pltpu.PrefetchScalarGridSpec(
            num_scalar_prefetch=0,
            grid=(N // tile_n,),
            in_specs=[
                pl.BlockSpec((tile_n, C), lambda i: (i, 0)),
                pl.BlockSpec((tile_n, 1), lambda i: (i, 0)),
            ],
            out_specs=pl.BlockSpec((8, 128), lambda i: (0, 0)),
            scratch_shapes=[pltpu.VMEM((tile_n, 1), jnp.float32)],
        ),
        compiler_params=pltpu.CompilerParams(
            dimension_semantics=("arbitrary",),
        ),
    )(pred, labels2d)

    return out[0, 0] / jnp.float32(N)


# ----------------------------------------------------------------------------
# Public entry point (mirrors GCELoss.forward) + pure-JAX reference.
# ----------------------------------------------------------------------------
def gce_loss(pred, labels, *, q=0.7, num_classes=2, tile_rows=None, tile_n=None,
             max_tile_rows=2048, max_tile_n=4096):
    """pred: (N, C) float; labels: (N,) int.  Returns scalar float32 GCE loss."""
    N, C = pred.shape
    assert C == num_classes, "pred's second dim must equal num_classes"
    if C == 2 and N % 64 == 0:
        return _gce_loss_2class(pred, labels, q=q, tile_rows=tile_rows,
                                max_tile_rows=max_tile_rows)
    # TODO(synk): pad N to a multiple of 64 so ragged batches also take the
    # fast interleaved 2-class path instead of the general fallback kernel.
    return _gce_loss_general(pred, labels, q=q, tile_n=tile_n,
                             max_tile_n=max_tile_n)


def gce_loss_ref(pred, labels, *, q=0.7, num_classes=2):
    """Pure-JAX reference mirroring the PyTorch module."""
    p = jax.nn.softmax(pred.astype(jnp.float32), axis=1)
    one_hot = jax.nn.one_hot(labels, num_classes, dtype=jnp.float32)
    p_true = jnp.sum(p * one_hot, axis=1)
    loss = (1.0 - jnp.power(p_true + 1e-8, q)) / q
    return jnp.mean(loss)


if __name__ == "__main__":
    keys = jax.random.split(jax.random.PRNGKey(0), 6)

    # --- num_classes = 2 (module default): small batch, single-block path ---
    N, C = 512, 2
    pred = jax.random.normal(keys[0], (N, C), dtype=jnp.float32)
    labels = jax.random.randint(keys[1], (N,), 0, C, dtype=jnp.int32)
    ref = gce_loss_ref(pred, labels, q=0.7, num_classes=C)
    out = jax.block_until_ready(gce_loss(pred, labels, q=0.7, num_classes=C))
    assert jnp.allclose(out, ref, rtol=2e-5, atol=2e-5), (out, ref)

    # Larger batch: default tiling -> two partials (v7x megacore leading axis).
    N2 = 8192
    pred2 = jax.random.normal(keys[2], (N2, C), dtype=jnp.float32)
    labels2 = jax.random.randint(keys[3], (N2,), 0, C, dtype=jnp.int32)
    ref2 = gce_loss_ref(pred2, labels2, q=0.7, num_classes=C)
    out2 = jax.block_until_ready(gce_loss(pred2, labels2, q=0.7, num_classes=C))
    assert jnp.allclose(out2, ref2, rtol=2e-5, atol=2e-5), (out2, ref2)

    # Forced smaller tiles: exercises the running accumulator (2 partials x 2 steps).
    out3 = jax.block_until_ready(
        gce_loss(pred2, labels2, q=0.7, num_classes=C, tile_rows=32))
    assert jnp.allclose(out3, ref2, rtol=2e-5, atol=2e-5), (out3, ref2)

    # --- general num_classes fallback kernel (natural (N, C) layout) ---
    N3, C3 = 256, 5
    pred3 = jax.random.normal(keys[4], (N3, C3), dtype=jnp.float32)
    labels3 = jax.random.randint(keys[5], (N3,), 0, C3, dtype=jnp.int32)
    ref3 = gce_loss_ref(pred3, labels3, q=0.7, num_classes=C3)
    out4 = jax.block_until_ready(
        gce_loss(pred3, labels3, q=0.7, num_classes=C3, tile_n=64))
    assert jnp.allclose(out4, ref3, rtol=2e-5, atol=2e-5), (out4, ref3)

    print("KERNEL_OK")
</pallas_src>

<mosaic_0001>
module attributes {stable_mosaic.version = 11 : i64} {
  func.func @_gce2_kernel(%arg0: i32, %arg1: i32, %arg2: memref<8x128xf32, #tpu.memory_space<vmem>>, %arg3: memref<8x128xi8, #tpu.memory_space<vmem>>, %arg4: memref<1x8x128xf32, #tpu.memory_space<vmem>>, %arg5: memref<8x128xf32, #tpu.memory_space<vmem>>, %arg6: memref<1x128xf32, #tpu.memory_space<vmem>>) attributes {dimension_semantics = [#tpu.dimension_semantics<parallel>, #tpu.dimension_semantics<arbitrary>], iteration_bounds = array<i64: 1, 1>, scalar_prefetch = 0 : i64, scratch_operands = 2 : i64, tpu.core_type = #tpu.core_type<tc>, window_params = [{transform_indices = @transform_0, window_bounds = array<i64: 8, 128>}, {transform_indices = @transform_1, window_bounds = array<i64: 8, 128>}, {transform_indices = @transform_2, window_bounds = array<i64: 1, 8, 128>}]} {
    %c0_i32 = arith.constant 0 : i32
    %0 = arith.cmpi eq, %arg1, %c0_i32 : i32
    %1 = arith.extui %0 : i1 to i32
    %c0_i32_0 = arith.constant 0 : i32
    %2 = arith.cmpi ne, %1, %c0_i32_0 : i32
    scf.if %2 {
      %cst_20 = arith.constant 0.000000e+00 : f32
      %37 = vector.broadcast %cst_20 : f32 to vector<8x128xf32>
      %c0_21 = arith.constant 0 : index
      %c0_22 = arith.constant 0 : index
      %38 = vector.load %arg5[%c0_21, %c0_22] : memref<8x128xf32, #tpu.memory_space<vmem>>, vector<8x128xf32>
      tpu.vector_store %arg5[%c0_21, %c0_22], %37 {strides = array<i32>} : memref<8x128xf32, #tpu.memory_space<vmem>>, vector<8x128xf32>,
      %39 = tpu.iota {dimensions = array<i32: 1>} : vector<1x128xi32>
      %c1_i32_23 = arith.constant 1 : i32
      %40 = tpu.dynamic_rotate %39 by %c1_i32_23 dim 1 : vector<1x128xi32>, i32 -> vector<1x128xi32>
      %c1_i32_24 = arith.constant 1 : i32
      %41 = vector.broadcast %c1_i32_24 : i32 to vector<1x128xi32>
      %42 = arith.addi %39, %41 : vector<1x128xi32>
      %c2_i32 = arith.constant 2 : i32
      %c0_i32_25 = arith.constant 0 : i32
      %43 = arith.cmpi eq, %c2_i32, %c0_i32_25 : i32
      %c1_i32_26 = arith.constant 1 : i32
      %44 = arith.select %43, %c1_i32_26, %c2_i32 : i32
      %45 = vector.broadcast %44 : i32 to vector<1x128xi32>
      %46 = arith.remsi %39, %45 : vector<1x128xi32>
      %c0_i32_27 = arith.constant 0 : i32
      %47 = vector.broadcast %c0_i32_27 : i32 to vector<1x128xi32>
      %48 = arith.cmpi ne, %46, %47 : vector<1x128xi32>
      %c0_i32_28 = arith.constant 0 : i32
      %49 = vector.broadcast %c0_i32_28 : i32 to vector<1x128xi32>
      %50 = arith.cmpi slt, %46, %49 : vector<1x128xi32>
      %c0_i32_29 = arith.constant 0 : i32
      %51 = arith.cmpi slt, %44, %c0_i32_29 : i32
      %52 = vector.broadcast %51 : i1 to vector<1x128xi1>
      %53 = vector.broadcast %52 : vector<1x128xi1> to vector<1x128xi1>
      %54 = arith.xori %50, %53 : vector<1x128xi1>
      %55 = arith.andi %54, %48 : vector<1x128xi1>
      %56 = vector.broadcast %44 : i32 to vector<1x128xi32>
      %57 = arith.addi %46, %56 : vector<1x128xi32>
      %58 = arith.select %55, %57, %46 : vector<1x128xi1>, vector<1x128xi32>
      %c2_i32_30 = arith.constant 2 : i32
      %59 = vector.broadcast %c2_i32_30 : i32 to vector<1x128xi32>
      %60 = arith.muli %59, %58 : vector<1x128xi32>
      %61 = arith.subi %42, %60 : vector<1x128xi32>
      %62 = arith.cmpi eq, %40, %61 : vector<1x128xi32>
      %63 = arith.extui %62 : vector<1x128xi1> to vector<1x128xi32>
      %64 = arith.sitofp %63 : vector<1x128xi32> to vector<1x128xf32>
      %c0_31 = arith.constant 0 : index
      %c0_32 = arith.constant 0 : index
      %65 = vector.load %arg6[%c0_31, %c0_32] : memref<1x128xf32, #tpu.memory_space<vmem>>, vector<1x128xf32>
      tpu.vector_store %arg6[%c0_31, %c0_32], %64 {strides = array<i32>} : memref<1x128xf32, #tpu.memory_space<vmem>>, vector<1x128xf32>,
    } else {
    }
    %c0 = arith.constant 0 : index
    %c0_1 = arith.constant 0 : index
    %3 = vector.load %arg2[%c0, %c0_1] : memref<8x128xf32, #tpu.memory_space<vmem>>, vector<8x128xf32>
    %c0_2 = arith.constant 0 : index
    %c0_3 = arith.constant 0 : index
    %4 = vector.load %arg3[%c0_2, %c0_3] : memref<8x128xi8, #tpu.memory_space<vmem>>, vector<8x128xi8>
    %5 = arith.extsi %4 : vector<8x128xi8> to vector<8x128xi32>
    %c0_i32_4 = arith.constant 0 : i32
    %6 = vector.broadcast %c0_i32_4 : i32 to vector<8x128xi32>
    %7 = arith.cmpi sgt, %5, %6 : vector<8x128xi32>
    %cst = arith.constant 0.000000e+00 : f32
    %8 = vector.broadcast %cst : f32 to vector<8x128xf32>
    %9 = arith.subf %8, %3 : vector<8x128xf32>
    %10 = arith.select %7, %3, %9 : vector<8x128xi1>, vector<8x128xf32>
    %c1_i32 = arith.constant 1 : i32
    %11 = tpu.dynamic_rotate %10 by %c1_i32 dim 1 : vector<8x128xf32>, i32 -> vector<8x128xf32>
    %12 = arith.addf %10, %11 : vector<8x128xf32>
    %cst_5 = arith.constant 0.000000e+00 : f32
    %13 = vector.broadcast %cst_5 : f32 to vector<8x128xf32>
    %14 = arith.subf %13, %12 : vector<8x128xf32>
    %15 = math.exp %14 : vector<8x128xf32>
    %cst_6 = arith.constant 1.000000e+00 : f32
    %16 = vector.broadcast %cst_6 : f32 to vector<8x128xf32>
    %17 = arith.addf %16, %15 : vector<8x128xf32>
    %cst_7 = arith.constant 1.000000e+00 : f32
    %18 = vector.broadcast %cst_7 : f32 to vector<8x128xf32>
    %19 = arith.divf %18, %17 : vector<8x128xf32>
    %cst_8 = arith.constant 9.99999993E-9 : f32
    %20 = vector.broadcast %cst_8 : f32 to vector<8x128xf32>
    %21 = arith.addf %19, %20 : vector<8x128xf32>
    %cst_9 = arith.constant 0.699999988 : f32
    %22 = vector.broadcast %cst_9 : f32 to vector<8x128xf32>
    %23 = math.powf %21, %22 : vector<8x128xf32>
    %cst_10 = arith.constant 1.000000e+00 : f32
    %24 = vector.broadcast %cst_10 : f32 to vector<8x128xf32>
    %25 = arith.subf %24, %23 : vector<8x128xf32>
    %cst_11 = arith.constant 1.42857146 : f32
    %26 = vector.broadcast %cst_11 : f32 to vector<8x128xf32>
    %27 = arith.mulf %25, %26 : vector<8x128xf32>
    %c0_12 = arith.constant 0 : index
    %c0_13 = arith.constant 0 : index
    %28 = vector.load %arg5[%c0_12, %c0_13] : memref<8x128xf32, #tpu.memory_space<vmem>>, vector<8x128xf32>
    %c0_14 = arith.constant 0 : index
    %c0_15 = arith.constant 0 : index
    %29 = vector.load %arg6[%c0_14, %c0_15] : memref<1x128xf32, #tpu.memory_space<vmem>>, vector<1x128xf32>
    %30 = vector.broadcast %29 : vector<1x128xf32> to vector<8x128xf32>
    %31 = arith.mulf %27, %30 : vector<8x128xf32>
    %32 = arith.addf %28, %31 : vector<8x128xf32>
    %c0_16 = arith.constant 0 : index
    %c0_17 = arith.constant 0 : index
    %33 = vector.load %arg5[%c0_16, %c0_17] : memref<8x128xf32, #tpu.memory_space<vmem>>, vector<8x128xf32>
    tpu.vector_store %arg5[%c0_16, %c0_17], %32 {strides = array<i32>} : memref<8x128xf32, #tpu.memory_space<vmem>>, vector<8x128xf32>,
    %c0_i32_18 = arith.constant 0 : i32
    %34 = arith.cmpi eq, %arg1, %c0_i32_18 : i32
    %35 = arith.extui %34 : i1 to i32
    %c0_i32_19 = arith.constant 0 : i32
    %36 = arith.cmpi ne, %35, %c0_i32_19 : i32
    scf.if %36 {
      %c0_20 = arith.constant 0 : index
      %c0_21 = arith.constant 0 : index
      %37 = vector.load %arg5[%c0_20, %c0_21] : memref<8x128xf32, #tpu.memory_space<vmem>>, vector<8x128xf32>
      %38 = vector.shape_cast %37 : vector<8x128xf32> to vector<1x8x128xf32>
      %cst_22 = arith.constant dense<0.000000e+00> : vector<1xf32>
      %39 = vector.multi_reduction <add>, %38, %cst_22 [1, 2] : vector<1x8x128xf32> to vector<1xf32>
      %40 = vector.shape_cast %39 : vector<1xf32> to vector<1x1x1xf32>
      %41 = vector.extract %40[0, 0, 0] : f32 from vector<1x1x1xf32>
      %42 = vector.broadcast %41 : f32 to vector<1x8x128xf32>
      %c0_23 = arith.constant 0 : index
      %c0_24 = arith.constant 0 : index
      %c0_25 = arith.constant 0 : index
      %43 = vector.load %arg4[%c0_23, %c0_24, %c0_25] : memref<1x8x128xf32, #tpu.memory_space<vmem>>, vector<1x8x128xf32>
      tpu.vector_store %arg4[%c0_23, %c0_24, %c0_25], %42 {strides = array<i32>} : memref<1x8x128xf32, #tpu.memory_space<vmem>>, vector<1x8x128xf32>,
    } else {
    }
    return
  }
  func.func @transform_0(%arg0: i32, %arg1: i32) -> (i32, i32) {
    %c1_i32 = arith.constant 1 : i32
    %0 = arith.muli %arg0, %c1_i32 : i32
    %1 = arith.addi %0, %arg1 : i32
    %c0_i32 = arith.constant 0 : i32
    %c0_i32_0 = arith.constant 0 : i32
    return %1, %c0_i32 : i32, i32
  }
  func.func @transform_1(%arg0: i32, %arg1: i32) -> (i32, i32) {
    %c1_i32 = arith.constant 1 : i32
    %0 = arith.muli %arg0, %c1_i32 : i32
    %1 = arith.addi %0, %arg1 : i32
    %c0_i32 = arith.constant 0 : i32
    %c0_i32_0 = arith.constant 0 : i32
    return %1, %c0_i32 : i32, i32
  }
  func.func @transform_2(%arg0: i32, %arg1: i32) -> (i32, i32, i32) {
    %c0_i32 = arith.constant 0 : i32
    %c0_i32_0 = arith.constant 0 : i32
    %c0_i32_1 = arith.constant 0 : i32
    return %arg0, %c0_i32, %c0_i32_0 : i32, i32, i32
  }
}

</mosaic_0001>

<bundles_post_ra>
// kernel: tpu_custom_call.1
= control target key start
LH: loop header
LB: loop body
LE: loop exit
PB: predicated region body
PF: predicated region fallthrough
CT: control target
= control target key end

     0   :  { %7 = vsyncpa [#allocation5], 0  ;;  %s344_s0 = inlined_call_operand.hbm [shape: f32[8,128], index: 0, kind: input, shape index: {}]   ;;  %s345_s1 = inlined_call_operand.hbm [shape: s8[8,128], index: 1, kind: input, shape index: {}]   ;;  %s346_s2 = inlined_call_operand.hbm [shape: f32[1,8,128], index: 2, kind: output, shape index: {}]  }
   0x1   :  { %8 = vsyncpa [#allocation8], 0 }
   0x2   :  { %9 = vsyncpa [#allocation6], 0  ;;  %s18_s11 = sshll.u32 %s344_s0, 4  ;;  %s313_s12 = smov [#allocation4]   ;;  %s19_s11 = int_to_ptr.hbm [resolvable:$true] %s18_s11 }
   0x3   :  { %s20_s13 = sshll.u32 %s313_s12, 4  ;;  %s32_s16 = sshll.u32 %s345_s1, 4  ;;  %s21_s13 = int_to_ptr.vmem [resolvable:$true] %s20_s13  ;;  %s33_s16 = int_to_ptr.hbm [resolvable:$true] %s32_s16 }
   0x4   :  { %23 = dma.hbm_to_vmem [thread:$0]  %s19_s11, 128, %s21_s13, [#allocation5]  }
   0x5   :  { %s314_s17 = smov [#allocation7]  }
   0x6   :  { %s34_s18 = sshll.u32 %s314_s17, 4  ;;  %s35_s18 = int_to_ptr.vmem [resolvable:$true] %s34_s18 }
   0x7   :  { %37 = dma.hbm_to_vmem [thread:$0]  %s33_s16, 32, %s35_s18, [#allocation8]  }
   0x8   :  { %307 = dma.done.wait [#allocation5], 128  }
   0x9   :  { %308 = vsyncadd [#allocation5], 4294967168 }
   0xa   :  { %309 = dma.done.wait [#allocation8], 32  }
   0xb   :  { %310 = vsyncadd [#allocation8], 4294967264  ;;  %v76_v0 = vld [vmem:[#allocation4] sm:$0xff]  ;;  %v77_v1 = vld [vmem:[#allocation7] sm:$0x3]  ;;  %s315_s0 = smov 1   ;;  %v53_v5 = vlaneseq }
   0xc   :  { %v78_v2 = vunpack.c.0.s8 %v77_v1  ;;  %v80_v3 = vsub.f32 0.0, %v76_v0  ;;  %v316_v16 = vmov 0.0   ;;  %s317_s1 = smov [#allocation9]   ;;  %s138_s22 = sshll.u32 %s346_s2, 4  ;;  %s139_s22 = int_to_ptr.hbm [resolvable:$true] %s138_s22 }
   0xd   :  { %v54_v6 = vand.u32 127, %v53_v5  ;;  %s136_s19 = sshll.u32 %s317_s1, 4  ;;  %s137_s19 = int_to_ptr.vmem [resolvable:$true] %s136_s19 }
   0xe   :  { %vm79_vm0 = vcmp.gt.s32.totalorder %v78_v2, 0 }
   0xf   :  { %v81_v4 = vsel %vm79_vm0, %v76_v0, %v80_v3  ;;  %v62_v7 = vand.u32 1, %v54_v6  ;;  %v57_v10 = vadd.s32 1, %v54_v6 }
  0x10   :  { %82 = vrot.lane.b32.xlu0 %v81_v4, %s315_s0 }
  0x11   :  { %v70_v11 = vmul.u32 2, %v62_v7 }
  0x13   :  { %v71_v14 = vsub.s32 %v57_v10, %v70_v11 }
  0x18   :  { %55 = vrot.lane.b32.xlu0 %v54_v6, %s315_s0 }
  0x82   :  { %v83_v8 = vpop.permute.xlu0 %82 }
  0x83   :  { %v84_v9 = vadd.f32 %v83_v8, %v81_v4 }
  0x85   :  { %v85_v12 = vsub.f32 0.0, %v84_v9 }
  0x87   :  { %v86_v13 = vmul.f32 1.442695, %v85_v12 }
  0x89   :  { %229 = vpow2.f32 %v86_v13 }
  0x8a   :  { %v56_v15 = vpop.permute.xlu0 %55 }
  0x8b   :  { %vm72_vm1 = vcmp.eq.s32.totalorder %v56_v15, %v71_v14 }
  0x8c   :  { %v149_v17 = vsel %vm72_vm1, 1.0, %v316_v16 }
  0x8d   :  { %75 = vst [vmem:[#allocation3] sm:$0x1] %v149_v17 }
  0x8f   :  { %v230_v18 = vpop.eup %229 }
  0x90   :  { %v88_v19 = vadd.f32 1.0, %v230_v18 }
  0x92   :  { %231 = vrcp.f32 %v88_v19  ;;  %v100_v23 = vand.u32 2147483648, %v88_v19  ;;  %v98_v25 = vand.u32 2147483647, %v88_v19  ;;  %vm94_vm3 = vweird.f32 %v88_v19 }
  0x94   :  { %v101_v27 = vor.u32 1.1754944e-38, %v100_v23  ;;  %vm99_vm5 = vcmp.eq.f32.partialorder %v98_v25, 8.507059e+37  ;;  %v228_v12 = vld [vmem:[#allocation3] ss:$0 sm:$0xff] }
  0x98   :  { %v232_v20 = vpop.eup %231 }
  0x99   :  { %v90_v21 = vmul.f32 %v232_v20, %v88_v19  ;;  %vm95_vm2 = vweird.f32 %v232_v20 }
  0x9a   :  { %vm96_vm4 = vmor %vm94_vm3, %vm95_vm2 }
  0x9b   :  { %v91_v22 = vsub.f32 1.0, %v90_v21 }
  0x9d   :  { %v92_v24 = vmul.f32 %v232_v20, %v91_v22 }
  0x9f   :  { %v93_v26 = vadd.f32 %v232_v20, %v92_v24 }
  0xa1   :  { %v97_v28 = vsel %vm96_vm4, %v232_v20, %v93_v26 }
  0xa2   :  { %v102_v29 = vsel %vm99_vm5, %v101_v27, %v97_v28 }
  0xa3   :  { %v104_v30 = vadd.f32 1e-08, %v102_v29 }
  0xa5   :  { %v154_v31 = vand.u32 2147483647, %v104_v30  ;;  %vm201_vm11 = vcmp.lt.f32.partialorder %v104_v30, 0  ;;  %vm202_vm12 = vcmp.eq.f32.partialorder %v104_v30, 0  ;;  %vm214_vm14 = vcmp.ne.f32.partialorder %v104_v30, %v104_v30 }
  0xa6   :  { %vm203_vm15 = vcmp.eq.f32.partialorder %v104_v30, 1065353216 }
  0xa7   :  { %v160_v32 = vand.u32 8388607, %v154_v31  ;;  %v156_v40 = vand.u32 2139095040, %v154_v31  ;;  %vm194_vm7 = vweird.f32 %v154_v31  ;;  %vm193_vm8 = vcmp.lt.f32.partialorder %v154_v31, 0.0 }
  0xa8   :  { %vm192_vm9 = vcmp.eq.f32.partialorder %v154_v31, 0.0  ;;  %vm191_vm10 = vcmp.eq.f32.partialorder %v154_v31, 1.0  ;;  %vm206_vm13 = vcmp.eq.f32.partialorder %v154_v31, 2139095040 }
  0xa9   :  { %v161_v33 = vor.u32 8388608, %v160_v32  ;;  %v157_v45 = vshrl.u32 %v156_v40, 23 }
  0xab   :  { %v163_v34 = vand.u32 8388607, %v161_v33  ;;  %v219_v50 = vadd.s32 4294967169, %v157_v45 }
  0xad   :  { %v164_v35 = vor.u32 1065353216, %v163_v34  ;;  %v168_v55 = vadd.s32 1, %v219_v50 }
  0xaf   :  { %vm165_vm6 = vcmp.ge.f32.partialorder %v164_v35, 1.4142135  ;;  %v166_v36 = vmul.f32 0.5, %v164_v35 }
  0xb0   :  { %v169_v59 = vsel %vm165_vm6, %v168_v55, %v219_v50 }
  0xb1   :  { %v167_v37 = vsel %vm165_vm6, %v166_v36, %v164_v35  ;;  %v189_v62 = vcvt.s32.f32 %v169_v59 }
  0xb2   :  { %v220_v38 = vadd.f32 -1.0, %v167_v37 }
  0xb4   :  { %v171_v39 = vmul.f32 %v220_v38, %v220_v38 }
  0xb6   :  { %v172_v41 = vmul.f32 0.12621109, %v171_v39  ;;  %v174_v42 = vmul.f32 -0.20706727, %v171_v39 }
  0xb8   :  { %v173_v43 = vadd.f32 0.21545328, %v172_v41  ;;  %v175_v44 = vadd.f32 -0.23896284, %v174_v42 }
  0xba   :  { %v176_v46 = vmul.f32 %v173_v43, %v171_v39  ;;  %v178_v47 = vmul.f32 %v175_v44, %v171_v39 }
  0xbc   :  { %v177_v48 = vadd.f32 0.28795174, %v176_v46  ;;  %v179_v49 = vadd.f32 -0.3607037, %v178_v47 }
  0xbe   :  { %v180_v51 = vmul.f32 %v177_v48, %v171_v39  ;;  %v182_v52 = vmul.f32 %v179_v49, %v171_v39 }
  0xc0   :  { %v181_v53 = vadd.f32 0.48090908, %v180_v51  ;;  %v183_v54 = vadd.f32 -0.72134733, %v182_v52 }
  0xc2   :  { %v184_v56 = vmul.f32 %v181_v53, %v171_v39  ;;  %v186_v58 = vmul.f32 %v220_v38, %v183_v54 }
  0xc4   :  { %v185_v57 = vadd.f32 1.442695, %v184_v56 }
  0xc6   :  { %v187_v60 = vadd.f32 %v186_v58, %v185_v57 }
  0xc8   :  { %v188_v61 = vmul.f32 %v220_v38, %v187_v60 }
  0xca   :  { %v190_v63 = vadd.f32 %v189_v62, %v188_v61 }
  0xcc   :  { %v195_v0 = vsel %vm194_vm7, %v154_v31, %v190_v63 }
  0xcd   :  { %v196_v1 = vsel %vm193_vm8, nan, %v195_v0 }
  0xce   :  { %v197_v2 = vsel %vm192_vm9, -inf, %v196_v1 }
  0xcf   :  { %v198_v3 = vsel %vm191_vm10, 0.0, %v197_v2 }
  0xd0   :  { %v199_v4 = vmul.f32 0.7, %v198_v3 }
  0xd2   :  { %233 = vpow2.f32 %v199_v4 }
  0xd8   :  { %v234_v5 = vpop.eup %233 }
  0xd9   :  { %v207_v6 = vsel %vm201_vm11, 2143289344, %v234_v5 }
  0xda   :  { %v208_v7 = vsel %vm202_vm12, 0, %v207_v6 }
  0xdb   :  { %v213_v8 = vsel %vm206_vm13, 2139095040, %v208_v7 }
  0xdc   :  { %v217_v9 = vsel %vm214_vm14, 2143289344, %v213_v8 }
  0xdd   :  { %v218_v10 = vsel %vm203_vm15, 1065353216, %v217_v9 }
  0xde   :  { %v106_v11 = vsub.f32 1.0, %v218_v10 }
  0xe0   :  { %v107_v13 = vmul.f32 1.4285715, %v106_v11 }
  0xe2   :  { %v113_v14 = vmul.f32 %v228_v12, %v107_v13 }
  0xe4   :  { %120 = vadd.xlane.f32.xlu1 %v113_v14 }
 0x157   :  { %v121_v15 = vpop.xlane.xlu1 %120 }
 0x158   :  { %v122_v16 = vrot.slane %v121_v15, 4 }
 0x15a   :  { %v123_v17 = vadd.f32 %v122_v16, %v121_v15 }
 0x15c   :  { %v124_v18 = vrot.slane %v123_v17, 2 }
 0x15e   :  { %v125_v19 = vadd.f32 %v124_v18, %v123_v17 }
 0x160   :  { %v126_v20 = vrot.slane %v125_v19, 1 }
 0x162   :  { %v127_v21 = vadd.f32 %v126_v20, %v125_v19 }
 0x164   :  { %221 = vpush %v127_v21 }
 0x195   :  { %s222_s23 = spop %221 }
 0x196   :  { %v129_v22 = vstv %s222_s23 }
 0x197   :  { %130 = vst [vmem:[#allocation9] sm:$0xff] %v129_v22 }
 0x198   :  { %141 = dma.vmem_to_hbm [thread:$0]  %s137_s19, 128, %s139_s22, [#allocation6]  }
 0x199   :  { %311 = dma.done.wait [#allocation6], 128  }
 0x19a   :  { %312 = vsyncadd [#allocation6], 4294967168 }
 0x19b   :  { %146 = vsyncpa [#allocation5], 1 }
 0x19c   :  { %147 = vsyncpa [#allocation8], 1 }
 0x19d   :  { %148 = vsyncpa [#allocation6], 1 }

</bundles_post_ra>
